<compile_context>
chip_gen: v7x
topology: tpu7x:2x2x1
jax: 0.10.0
libtpu: 0.0.40
codegen_flags: <defaults>
</compile_context>

<pallas_src>
import functools

import jax
import jax.numpy as jnp
from jax import lax
from jax.experimental import pallas as pl
from jax.experimental.pallas import tpu as pltpu


_LANE = 128     # TPU vreg lane width
_SUBLANE = 8    # TPU vreg sublane height (batch tile)


def _round_up(x, m):
    return (x + m - 1) // m * m


def _choose_vocab_tile(vocab_size, embedding_size):
    """Vocab (lane) tile: large (>=512 ideally) for unmasked lane-dense stores
    and amortized grid-step overhead, but small enough that the double-buffered
    bf16 weight tile fits comfortably in VMEM on every chip (sized against
    v7x's 64 MiB physical / 32 MiB scoped VMEM)."""
    tv = min(2048, _round_up(vocab_size, _LANE))
    # 2 pipeline buffers x (E x tv) bf16 weight tile <= ~8 MiB
    while tv > _LANE and 2 * embedding_size * tv * 2 > (8 << 20):
        tv = max(_LANE, (tv // 2) // _LANE * _LANE)
    return tv


def prepare_linear4_weight(weight, vocab_tile):
    """One-time (parameter-init-time) layout of linear4's (V, E) weight into
    the (E, V_pad) bf16 slab the kernel streams. Never executed per call."""
    vocab_size, _ = weight.shape
    v_pad = _round_up(vocab_size, vocab_tile)
    w_t = jnp.transpose(weight).astype(jnp.bfloat16)          # (E, V)
    if v_pad != vocab_size:
        w_t = jnp.pad(w_t, ((0, 0), (0, v_pad - vocab_size)))  # (E, V_pad)
    return w_t


def _autoencoder_kernel(idx_ref, emb_hbm, wt_ref, out_ref,
                        x_ref, m_ref, l_ref, sem,
                        *, valid_v, tv):
    """idx_ref: (B_pad,) int32 scalar-prefetch (SMEM); emb_hbm: (V, E) f32 HBM;
    wt_ref: (E, tv) bf16 VMEM tile (auto-pipelined); out_ref: (tb, V_pad) f32
    VMEM block, resident across the vocab grid axis; x/m/l: VMEM scratch."""
    i = pl.program_id(0)            # batch tile (parallel)
    j = pl.program_id(1)            # vocab tile (arbitrary, online softmax)
    n_vtiles = pl.num_programs(1)
    tb = x_ref.shape[0]

    @pl.when(j == 0)
    def _init():
        # Gather only the tb embedding rows this batch tile needs, straight
        # from HBM into VMEM scratch (the table never resides in VMEM).
        for b in range(tb):                                     # tb == 8, unrolled
            row = idx_ref[i * tb + b]
            row = jnp.minimum(jnp.maximum(row, 0), valid_v - 1)  # OOB-id guard
            pltpu.make_async_copy(emb_hbm.at[pl.ds(row, 1), :],
                                  x_ref.at[pl.ds(b, 1), :],
                                  sem.at[b]).start()
        for b in range(tb):
            pltpu.make_async_copy(emb_hbm.at[pl.ds(0, 1), :],
                                  x_ref.at[pl.ds(b, 1), :],
                                  sem.at[b]).wait()
        m_ref[...] = jnp.full_like(m_ref, -jnp.inf)
        l_ref[...] = jnp.zeros_like(l_ref)

    # linear4 (no bias): one vocab tile of logits. bf16 MXU feed, f32 accumulate.
    x = x_ref[...].astype(jnp.bfloat16)                          # (tb, E)
    logits = jnp.dot(x, wt_ref[...],
                     preferred_element_type=jnp.float32)         # (tb, tv)

    # Mask padded vocab lanes before they enter the softmax statistics.
    lane = j * tv + lax.broadcasted_iota(jnp.int32, logits.shape, 1)
    logits = jnp.where(lane < valid_v, logits, jnp.float32(-1e30))

    # Online softmax running statistics.
    m_old = m_ref[...]
    m_new = jnp.maximum(m_old, jnp.max(logits, axis=-1, keepdims=True))
    l_ref[...] = (l_ref[...] * jnp.exp(m_old - m_new)
                  + jnp.sum(jnp.exp(logits - m_new), axis=-1, keepdims=True))
    m_ref[...] = m_new

    # Stash raw (masked) logits into the VMEM-resident output block.
    col = pl.multiple_of(j * tv, _LANE)
    out_ref[:, pl.ds(col, tv)] = logits

    @pl.when(j == n_vtiles - 1)
    def _finalize():
        z = out_ref[...]                                         # (tb, V_pad)
        p = jnp.exp(z - m_ref[...])
        out_ref[...] = p * pl.reciprocal(l_ref[...], approx=True)


def autoencoder_forward(inputs, emb_table, w_t_padded, *, vocab_size, vocab_tile):
    """inputs: (B,) int ids; emb_table: (V, E) f32; w_t_padded: (E, V_pad) bf16
    (from prepare_linear4_weight). Returns softmax(Emb(inputs) @ W^T) : (B, V)."""
    vocab = vocab_size
    emb_dim = emb_table.shape[1]
    tv = vocab_tile
    v_pad = w_t_padded.shape[1]
    assert v_pad % tv == 0

    batch = inputs.shape[0]
    tb = _SUBLANE
    b_pad = _round_up(max(batch, tb), tb)
    ids = jnp.zeros((b_pad,), jnp.int32).at[:batch].set(inputs.astype(jnp.int32))

    grid = (b_pad // tb, v_pad // tv)

    # Explicit scoped-VMEM budget: double-buffered bf16 W tile + resident
    # output block + embedding-row scratch, with headroom.
    need = (2 * emb_dim * tv * 2 + 2 * tb * v_pad * 4
            + tb * emb_dim * 4 + (1 << 16))
    vmem_limit = int(min(max(2 * need, 4 << 20), 48 << 20))

    kernel = functools.partial(_autoencoder_kernel, valid_v=vocab, tv=tv)

    out_padded = pl.pallas_call(
        kernel,
        out_shape=jax.ShapeDtypeStruct((b_pad, v_pad), jnp.float32),
        grid_spec=pltpu.PrefetchScalarGridSpec(
            num_scalar_prefetch=1,                                  # token ids
            grid=grid,
            in_specs=[
                pl.BlockSpec(memory_space=pl.ANY),                  # emb table in HBM
                pl.BlockSpec((emb_dim, tv), lambda i, j, ids_ref: (0, j)),  # W^T tile
            ],
            out_specs=pl.BlockSpec((tb, v_pad), lambda i, j, ids_ref: (i, 0)),
            scratch_shapes=[
                pltpu.VMEM((tb, emb_dim), jnp.float32),   # gathered embedding rows
                pltpu.VMEM((tb, 1), jnp.float32),         # running max m
                pltpu.VMEM((tb, 1), jnp.float32),         # running sum l
                pltpu.SemaphoreType.DMA((tb,)),           # row-gather DMA sems
            ],
        ),
        compiler_params=pltpu.CompilerParams(
            dimension_semantics=("parallel", "arbitrary"),
            vmem_limit_bytes=vmem_limit,
        ),
    )(ids, emb_table, w_t_padded)

    return out_padded[:batch, :vocab]


if __name__ == "__main__":
    # Small shapes implied by the module: batch of token ids, vocab, embedding dim.
    B, V, E = 8, 32, 16

    key = jax.random.PRNGKey(0)
    k_ids, k_emb, k_w = jax.random.split(key, 3)

    inputs = jax.random.randint(k_ids, (B,), 0, V, dtype=jnp.int32)
    # nn.Embedding default init: N(0, 1)
    emb_table = jax.random.normal(k_emb, (V, E), dtype=jnp.float32)
    # nn.Linear default init: U(-1/sqrt(in), 1/sqrt(in)), in = E
    bound = 1.0 / float(E) ** 0.5
    weight = jax.random.uniform(k_w, (V, E), jnp.float32, -bound, bound)

    # One-time, init-time parameter layout (hoisted out of the forward path).
    tv = _choose_vocab_tile(V, E)
    w_t = prepare_linear4_weight(weight, tv)

    out = autoencoder_forward(inputs, emb_table, w_t, vocab_size=V, vocab_tile=tv)
    out = jax.block_until_ready(out)

    # Reference in plain f32 JAX. Tolerance covers the bf16 MXU feed and the
    # EUP approximate-reciprocal softmax normalization.
    ref = jax.nn.softmax(emb_table[inputs] @ weight.T, axis=1)
    assert out.shape == (B, V)
    assert jnp.allclose(out, ref, atol=1e-2, rtol=1e-2), "mismatch vs reference"

    print("KERNEL_OK")
</pallas_src>

<mosaic_0001>
module attributes {stable_mosaic.version = 11 : i64} {
  func.func @_autoencoder_kernel(%arg0: i32, %arg1: i32, %arg2: memref<8xi32, #tpu.memory_space<smem>>, %arg3: memref<32x16xf32, #tpu.memory_space<any>>, %arg4: memref<16x128xbf16, #tpu.memory_space<vmem>>, %arg5: memref<8x128xf32, #tpu.memory_space<vmem>>, %arg6: memref<8x16xf32, #tpu.memory_space<vmem>>, %arg7: memref<8x1xf32, #tpu.memory_space<vmem>>, %arg8: memref<8x1xf32, #tpu.memory_space<vmem>>, %arg9: memref<8x!tpu.dma_semaphore, #tpu.memory_space<semaphore_mem>>) attributes {dimension_semantics = [#tpu.dimension_semantics<parallel>, #tpu.dimension_semantics<arbitrary>], iteration_bounds = array<i64: 1, 1>, scalar_prefetch = 1 : i64, scratch_operands = 4 : i64, tpu.core_type = #tpu.core_type<tc>, window_params = [{}, {transform_indices = @transform_1, window_bounds = array<i64: 16, 128>}, {transform_indices = @transform_2, window_bounds = array<i64: 8, 128>}]} {
    %c0_i32 = arith.constant 0 : i32
    %0 = arith.cmpi eq, %arg1, %c0_i32 : i32
    %1 = arith.extui %0 : i1 to i32
    %c0_i32_0 = arith.constant 0 : i32
    %2 = arith.cmpi ne, %1, %c0_i32_0 : i32
    scf.if %2 {
      %c8_i32 = arith.constant 8 : i32
      %38 = arith.muli %arg0, %c8_i32 : i32
      %c0_i32_19 = arith.constant 0 : i32
      %39 = arith.addi %38, %c0_i32_19 : i32
      %40 = arith.index_cast %39 : i32 to index
      %41 = memref.load %arg2[%40] : memref<8xi32, #tpu.memory_space<smem>>
      %c0_i32_20 = arith.constant 0 : i32
      %42 = arith.maxsi %41, %c0_i32_20 : i32
      %c31_i32 = arith.constant 31 : i32
      %43 = arith.minsi %42, %c31_i32 : i32
      %c0_i32_21 = arith.constant 0 : i32
      %c0_i32_22 = arith.constant 0 : i32
      %44 = tpu.memref_slice %arg3[%43, %c0_i32_22] : memref<32x16xf32, #tpu.memory_space<any>> -> memref<1x16xf32, #tpu.memory_space<any>>
      %c0_i32_23 = arith.constant 0 : i32
      %c0_i32_24 = arith.constant 0 : i32
      %45 = tpu.memref_slice %arg6[%c0_i32_23, %c0_i32_24] : memref<8x16xf32, #tpu.memory_space<vmem>> -> memref<1x16xf32, #tpu.memory_space<vmem>>
      %46 = tpu.memref_slice %arg9[%c0_i32_21] : memref<8x!tpu.dma_semaphore, #tpu.memory_space<semaphore_mem>> -> memref<1x!tpu.dma_semaphore, #tpu.memory_space<semaphore_mem>>
      %47 = tpu.memref_squeeze %46 : memref<1x!tpu.dma_semaphore, #tpu.memory_space<semaphore_mem>> -> memref<!tpu.dma_semaphore, #tpu.memory_space<semaphore_mem>>
      tpu.enqueue_dma source(%44 : memref<1x16xf32, #tpu.memory_space<any>>) target(%45 : memref<1x16xf32, #tpu.memory_space<vmem>>) target_semaphore(%47 : memref<!tpu.dma_semaphore, #tpu.memory_space<semaphore_mem>>)
      %c8_i32_25 = arith.constant 8 : i32
      %48 = arith.muli %arg0, %c8_i32_25 : i32
      %c1_i32 = arith.constant 1 : i32
      %49 = arith.addi %48, %c1_i32 : i32
      %50 = arith.index_cast %49 : i32 to index
      %51 = memref.load %arg2[%50] : memref<8xi32, #tpu.memory_space<smem>>
      %c0_i32_26 = arith.constant 0 : i32
      %52 = arith.maxsi %51, %c0_i32_26 : i32
      %c31_i32_27 = arith.constant 31 : i32
      %53 = arith.minsi %52, %c31_i32_27 : i32
      %c1_i32_28 = arith.constant 1 : i32
      %c0_i32_29 = arith.constant 0 : i32
      %54 = tpu.memref_slice %arg3[%53, %c0_i32_29] : memref<32x16xf32, #tpu.memory_space<any>> -> memref<1x16xf32, #tpu.memory_space<any>>
      %c1_i32_30 = arith.constant 1 : i32
      %c0_i32_31 = arith.constant 0 : i32
      %55 = tpu.memref_slice %arg6[%c1_i32_30, %c0_i32_31] : memref<8x16xf32, #tpu.memory_space<vmem>> -> memref<1x16xf32, #tpu.memory_space<vmem>>
      %56 = tpu.memref_slice %arg9[%c1_i32_28] : memref<8x!tpu.dma_semaphore, #tpu.memory_space<semaphore_mem>> -> memref<1x!tpu.dma_semaphore, #tpu.memory_space<semaphore_mem>>
      %57 = tpu.memref_squeeze %56 : memref<1x!tpu.dma_semaphore, #tpu.memory_space<semaphore_mem>> -> memref<!tpu.dma_semaphore, #tpu.memory_space<semaphore_mem>>
      tpu.enqueue_dma source(%54 : memref<1x16xf32, #tpu.memory_space<any>>) target(%55 : memref<1x16xf32, #tpu.memory_space<vmem>>) target_semaphore(%57 : memref<!tpu.dma_semaphore, #tpu.memory_space<semaphore_mem>>)
      %c8_i32_32 = arith.constant 8 : i32
      %58 = arith.muli %arg0, %c8_i32_32 : i32
      %c2_i32 = arith.constant 2 : i32
      %59 = arith.addi %58, %c2_i32 : i32
      %60 = arith.index_cast %59 : i32 to index
      %61 = memref.load %arg2[%60] : memref<8xi32, #tpu.memory_space<smem>>
      %c0_i32_33 = arith.constant 0 : i32
      %62 = arith.maxsi %61, %c0_i32_33 : i32
      %c31_i32_34 = arith.constant 31 : i32
      %63 = arith.minsi %62, %c31_i32_34 : i32
      %c2_i32_35 = arith.constant 2 : i32
      %c0_i32_36 = arith.constant 0 : i32
      %64 = tpu.memref_slice %arg3[%63, %c0_i32_36] : memref<32x16xf32, #tpu.memory_space<any>> -> memref<1x16xf32, #tpu.memory_space<any>>
      %c2_i32_37 = arith.constant 2 : i32
      %c0_i32_38 = arith.constant 0 : i32
      %65 = tpu.memref_slice %arg6[%c2_i32_37, %c0_i32_38] : memref<8x16xf32, #tpu.memory_space<vmem>> -> memref<1x16xf32, #tpu.memory_space<vmem>>
      %66 = tpu.memref_slice %arg9[%c2_i32_35] : memref<8x!tpu.dma_semaphore, #tpu.memory_space<semaphore_mem>> -> memref<1x!tpu.dma_semaphore, #tpu.memory_space<semaphore_mem>>
      %67 = tpu.memref_squeeze %66 : memref<1x!tpu.dma_semaphore, #tpu.memory_space<semaphore_mem>> -> memref<!tpu.dma_semaphore, #tpu.memory_space<semaphore_mem>>
      tpu.enqueue_dma source(%64 : memref<1x16xf32, #tpu.memory_space<any>>) target(%65 : memref<1x16xf32, #tpu.memory_space<vmem>>) target_semaphore(%67 : memref<!tpu.dma_semaphore, #tpu.memory_space<semaphore_mem>>)
      %c8_i32_39 = arith.constant 8 : i32
      %68 = arith.muli %arg0, %c8_i32_39 : i32
      %c3_i32 = arith.constant 3 : i32
      %69 = arith.addi %68, %c3_i32 : i32
      %70 = arith.index_cast %69 : i32 to index
      %71 = memref.load %arg2[%70] : memref<8xi32, #tpu.memory_space<smem>>
      %c0_i32_40 = arith.constant 0 : i32
      %72 = arith.maxsi %71, %c0_i32_40 : i32
      %c31_i32_41 = arith.constant 31 : i32
      %73 = arith.minsi %72, %c31_i32_41 : i32
      %c3_i32_42 = arith.constant 3 : i32
      %c0_i32_43 = arith.constant 0 : i32
      %74 = tpu.memref_slice %arg3[%73, %c0_i32_43] : memref<32x16xf32, #tpu.memory_space<any>> -> memref<1x16xf32, #tpu.memory_space<any>>
      %c3_i32_44 = arith.constant 3 : i32
      %c0_i32_45 = arith.constant 0 : i32
      %75 = tpu.memref_slice %arg6[%c3_i32_44, %c0_i32_45] : memref<8x16xf32, #tpu.memory_space<vmem>> -> memref<1x16xf32, #tpu.memory_space<vmem>>
      %76 = tpu.memref_slice %arg9[%c3_i32_42] : memref<8x!tpu.dma_semaphore, #tpu.memory_space<semaphore_mem>> -> memref<1x!tpu.dma_semaphore, #tpu.memory_space<semaphore_mem>>
      %77 = tpu.memref_squeeze %76 : memref<1x!tpu.dma_semaphore, #tpu.memory_space<semaphore_mem>> -> memref<!tpu.dma_semaphore, #tpu.memory_space<semaphore_mem>>
      tpu.enqueue_dma source(%74 : memref<1x16xf32, #tpu.memory_space<any>>) target(%75 : memref<1x16xf32, #tpu.memory_space<vmem>>) target_semaphore(%77 : memref<!tpu.dma_semaphore, #tpu.memory_space<semaphore_mem>>)
      %c8_i32_46 = arith.constant 8 : i32
      %78 = arith.muli %arg0, %c8_i32_46 : i32
      %c4_i32 = arith.constant 4 : i32
      %79 = arith.addi %78, %c4_i32 : i32
      %80 = arith.index_cast %79 : i32 to index
      %81 = memref.load %arg2[%80] : memref<8xi32, #tpu.memory_space<smem>>
      %c0_i32_47 = arith.constant 0 : i32
      %82 = arith.maxsi %81, %c0_i32_47 : i32
      %c31_i32_48 = arith.constant 31 : i32
      %83 = arith.minsi %82, %c31_i32_48 : i32
      %c4_i32_49 = arith.constant 4 : i32
      %c0_i32_50 = arith.constant 0 : i32
      %84 = tpu.memref_slice %arg3[%83, %c0_i32_50] : memref<32x16xf32, #tpu.memory_space<any>> -> memref<1x16xf32, #tpu.memory_space<any>>
      %c4_i32_51 = arith.constant 4 : i32
      %c0_i32_52 = arith.constant 0 : i32
      %85 = tpu.memref_slice %arg6[%c4_i32_51, %c0_i32_52] : memref<8x16xf32, #tpu.memory_space<vmem>> -> memref<1x16xf32, #tpu.memory_space<vmem>>
      %86 = tpu.memref_slice %arg9[%c4_i32_49] : memref<8x!tpu.dma_semaphore, #tpu.memory_space<semaphore_mem>> -> memref<1x!tpu.dma_semaphore, #tpu.memory_space<semaphore_mem>>
      %87 = tpu.memref_squeeze %86 : memref<1x!tpu.dma_semaphore, #tpu.memory_space<semaphore_mem>> -> memref<!tpu.dma_semaphore, #tpu.memory_space<semaphore_mem>>
      tpu.enqueue_dma source(%84 : memref<1x16xf32, #tpu.memory_space<any>>) target(%85 : memref<1x16xf32, #tpu.memory_space<vmem>>) target_semaphore(%87 : memref<!tpu.dma_semaphore, #tpu.memory_space<semaphore_mem>>)
      %c8_i32_53 = arith.constant 8 : i32
      %88 = arith.muli %arg0, %c8_i32_53 : i32
      %c5_i32 = arith.constant 5 : i32
      %89 = arith.addi %88, %c5_i32 : i32
      %90 = arith.index_cast %89 : i32 to index
      %91 = memref.load %arg2[%90] : memref<8xi32, #tpu.memory_space<smem>>
      %c0_i32_54 = arith.constant 0 : i32
      %92 = arith.maxsi %91, %c0_i32_54 : i32
      %c31_i32_55 = arith.constant 31 : i32
      %93 = arith.minsi %92, %c31_i32_55 : i32
      %c5_i32_56 = arith.constant 5 : i32
      %c0_i32_57 = arith.constant 0 : i32
      %94 = tpu.memref_slice %arg3[%93, %c0_i32_57] : memref<32x16xf32, #tpu.memory_space<any>> -> memref<1x16xf32, #tpu.memory_space<any>>
      %c5_i32_58 = arith.constant 5 : i32
      %c0_i32_59 = arith.constant 0 : i32
      %95 = tpu.memref_slice %arg6[%c5_i32_58, %c0_i32_59] : memref<8x16xf32, #tpu.memory_space<vmem>> -> memref<1x16xf32, #tpu.memory_space<vmem>>
      %96 = tpu.memref_slice %arg9[%c5_i32_56] : memref<8x!tpu.dma_semaphore, #tpu.memory_space<semaphore_mem>> -> memref<1x!tpu.dma_semaphore, #tpu.memory_space<semaphore_mem>>
      %97 = tpu.memref_squeeze %96 : memref<1x!tpu.dma_semaphore, #tpu.memory_space<semaphore_mem>> -> memref<!tpu.dma_semaphore, #tpu.memory_space<semaphore_mem>>
      tpu.enqueue_dma source(%94 : memref<1x16xf32, #tpu.memory_space<any>>) target(%95 : memref<1x16xf32, #tpu.memory_space<vmem>>) target_semaphore(%97 : memref<!tpu.dma_semaphore, #tpu.memory_space<semaphore_mem>>)
      %c8_i32_60 = arith.constant 8 : i32
      %98 = arith.muli %arg0, %c8_i32_60 : i32
      %c6_i32 = arith.constant 6 : i32
      %99 = arith.addi %98, %c6_i32 : i32
      %100 = arith.index_cast %99 : i32 to index
      %101 = memref.load %arg2[%100] : memref<8xi32, #tpu.memory_space<smem>>
      %c0_i32_61 = arith.constant 0 : i32
      %102 = arith.maxsi %101, %c0_i32_61 : i32
      %c31_i32_62 = arith.constant 31 : i32
      %103 = arith.minsi %102, %c31_i32_62 : i32
      %c6_i32_63 = arith.constant 6 : i32
      %c0_i32_64 = arith.constant 0 : i32
      %104 = tpu.memref_slice %arg3[%103, %c0_i32_64] : memref<32x16xf32, #tpu.memory_space<any>> -> memref<1x16xf32, #tpu.memory_space<any>>
      %c6_i32_65 = arith.constant 6 : i32
      %c0_i32_66 = arith.constant 0 : i32
      %105 = tpu.memref_slice %arg6[%c6_i32_65, %c0_i32_66] : memref<8x16xf32, #tpu.memory_space<vmem>> -> memref<1x16xf32, #tpu.memory_space<vmem>>
      %106 = tpu.memref_slice %arg9[%c6_i32_63] : memref<8x!tpu.dma_semaphore, #tpu.memory_space<semaphore_mem>> -> memref<1x!tpu.dma_semaphore, #tpu.memory_space<semaphore_mem>>
      %107 = tpu.memref_squeeze %106 : memref<1x!tpu.dma_semaphore, #tpu.memory_space<semaphore_mem>> -> memref<!tpu.dma_semaphore, #tpu.memory_space<semaphore_mem>>
      tpu.enqueue_dma source(%104 : memref<1x16xf32, #tpu.memory_space<any>>) target(%105 : memref<1x16xf32, #tpu.memory_space<vmem>>) target_semaphore(%107 : memref<!tpu.dma_semaphore, #tpu.memory_space<semaphore_mem>>)
      %c8_i32_67 = arith.constant 8 : i32
      %108 = arith.muli %arg0, %c8_i32_67 : i32
      %c7_i32 = arith.constant 7 : i32
      %109 = arith.addi %108, %c7_i32 : i32
      %110 = arith.index_cast %109 : i32 to index
      %111 = memref.load %arg2[%110] : memref<8xi32, #tpu.memory_space<smem>>
      %c0_i32_68 = arith.constant 0 : i32
      %112 = arith.maxsi %111, %c0_i32_68 : i32
      %c31_i32_69 = arith.constant 31 : i32
      %113 = arith.minsi %112, %c31_i32_69 : i32
      %c7_i32_70 = arith.constant 7 : i32
      %c0_i32_71 = arith.constant 0 : i32
      %114 = tpu.memref_slice %arg3[%113, %c0_i32_71] : memref<32x16xf32, #tpu.memory_space<any>> -> memref<1x16xf32, #tpu.memory_space<any>>
      %c7_i32_72 = arith.constant 7 : i32
      %c0_i32_73 = arith.constant 0 : i32
      %115 = tpu.memref_slice %arg6[%c7_i32_72, %c0_i32_73] : memref<8x16xf32, #tpu.memory_space<vmem>> -> memref<1x16xf32, #tpu.memory_space<vmem>>
      %116 = tpu.memref_slice %arg9[%c7_i32_70] : memref<8x!tpu.dma_semaphore, #tpu.memory_space<semaphore_mem>> -> memref<1x!tpu.dma_semaphore, #tpu.memory_space<semaphore_mem>>
      %117 = tpu.memref_squeeze %116 : memref<1x!tpu.dma_semaphore, #tpu.memory_space<semaphore_mem>> -> memref<!tpu.dma_semaphore, #tpu.memory_space<semaphore_mem>>
      tpu.enqueue_dma source(%114 : memref<1x16xf32, #tpu.memory_space<any>>) target(%115 : memref<1x16xf32, #tpu.memory_space<vmem>>) target_semaphore(%117 : memref<!tpu.dma_semaphore, #tpu.memory_space<semaphore_mem>>)
      %c0_i32_74 = arith.constant 0 : i32
      %c0_i32_75 = arith.constant 0 : i32
      %c0_i32_76 = arith.constant 0 : i32
      %118 = tpu.memref_slice %arg3[%c0_i32_75, %c0_i32_76] : memref<32x16xf32, #tpu.memory_space<any>> -> memref<1x16xf32, #tpu.memory_space<any>>
      %c0_i32_77 = arith.constant 0 : i32
      %c0_i32_78 = arith.constant 0 : i32
      %119 = tpu.memref_slice %arg6[%c0_i32_77, %c0_i32_78] : memref<8x16xf32, #tpu.memory_space<vmem>> -> memref<1x16xf32, #tpu.memory_space<vmem>>
      %120 = tpu.memref_slice %arg9[%c0_i32_74] : memref<8x!tpu.dma_semaphore, #tpu.memory_space<semaphore_mem>> -> memref<1x!tpu.dma_semaphore, #tpu.memory_space<semaphore_mem>>
      %121 = tpu.memref_squeeze %120 : memref<1x!tpu.dma_semaphore, #tpu.memory_space<semaphore_mem>> -> memref<!tpu.dma_semaphore, #tpu.memory_space<semaphore_mem>>
      tpu.wait_dma2 semaphore(%121 : memref<!tpu.dma_semaphore, #tpu.memory_space<semaphore_mem>>) src(%118 : memref<1x16xf32, #tpu.memory_space<any>>) dst(%119 : memref<1x16xf32, #tpu.memory_space<vmem>>)
      %c1_i32_79 = arith.constant 1 : i32
      %c0_i32_80 = arith.constant 0 : i32
      %c0_i32_81 = arith.constant 0 : i32
      %122 = tpu.memref_slice %arg3[%c0_i32_80, %c0_i32_81] : memref<32x16xf32, #tpu.memory_space<any>> -> memref<1x16xf32, #tpu.memory_space<any>>
      %c1_i32_82 = arith.constant 1 : i32
      %c0_i32_83 = arith.constant 0 : i32
      %123 = tpu.memref_slice %arg6[%c1_i32_82, %c0_i32_83] : memref<8x16xf32, #tpu.memory_space<vmem>> -> memref<1x16xf32, #tpu.memory_space<vmem>>
      %124 = tpu.memref_slice %arg9[%c1_i32_79] : memref<8x!tpu.dma_semaphore, #tpu.memory_space<semaphore_mem>> -> memref<1x!tpu.dma_semaphore, #tpu.memory_space<semaphore_mem>>
      %125 = tpu.memref_squeeze %124 : memref<1x!tpu.dma_semaphore, #tpu.memory_space<semaphore_mem>> -> memref<!tpu.dma_semaphore, #tpu.memory_space<semaphore_mem>>
      tpu.wait_dma2 semaphore(%125 : memref<!tpu.dma_semaphore, #tpu.memory_space<semaphore_mem>>) src(%122 : memref<1x16xf32, #tpu.memory_space<any>>) dst(%123 : memref<1x16xf32, #tpu.memory_space<vmem>>)
      %c2_i32_84 = arith.constant 2 : i32
      %c0_i32_85 = arith.constant 0 : i32
      %c0_i32_86 = arith.constant 0 : i32
      %126 = tpu.memref_slice %arg3[%c0_i32_85, %c0_i32_86] : memref<32x16xf32, #tpu.memory_space<any>> -> memref<1x16xf32, #tpu.memory_space<any>>
      %c2_i32_87 = arith.constant 2 : i32
      %c0_i32_88 = arith.constant 0 : i32
      %127 = tpu.memref_slice %arg6[%c2_i32_87, %c0_i32_88] : memref<8x16xf32, #tpu.memory_space<vmem>> -> memref<1x16xf32, #tpu.memory_space<vmem>>
      %128 = tpu.memref_slice %arg9[%c2_i32_84] : memref<8x!tpu.dma_semaphore, #tpu.memory_space<semaphore_mem>> -> memref<1x!tpu.dma_semaphore, #tpu.memory_space<semaphore_mem>>
      %129 = tpu.memref_squeeze %128 : memref<1x!tpu.dma_semaphore, #tpu.memory_space<semaphore_mem>> -> memref<!tpu.dma_semaphore, #tpu.memory_space<semaphore_mem>>
      tpu.wait_dma2 semaphore(%129 : memref<!tpu.dma_semaphore, #tpu.memory_space<semaphore_mem>>) src(%126 : memref<1x16xf32, #tpu.memory_space<any>>) dst(%127 : memref<1x16xf32, #tpu.memory_space<vmem>>)
      %c3_i32_89 = arith.constant 3 : i32
      %c0_i32_90 = arith.constant 0 : i32
      %c0_i32_91 = arith.constant 0 : i32
      %130 = tpu.memref_slice %arg3[%c0_i32_90, %c0_i32_91] : memref<32x16xf32, #tpu.memory_space<any>> -> memref<1x16xf32, #tpu.memory_space<any>>
      %c3_i32_92 = arith.constant 3 : i32
      %c0_i32_93 = arith.constant 0 : i32
      %131 = tpu.memref_slice %arg6[%c3_i32_92, %c0_i32_93] : memref<8x16xf32, #tpu.memory_space<vmem>> -> memref<1x16xf32, #tpu.memory_space<vmem>>
      %132 = tpu.memref_slice %arg9[%c3_i32_89] : memref<8x!tpu.dma_semaphore, #tpu.memory_space<semaphore_mem>> -> memref<1x!tpu.dma_semaphore, #tpu.memory_space<semaphore_mem>>
      %133 = tpu.memref_squeeze %132 : memref<1x!tpu.dma_semaphore, #tpu.memory_space<semaphore_mem>> -> memref<!tpu.dma_semaphore, #tpu.memory_space<semaphore_mem>>
      tpu.wait_dma2 semaphore(%133 : memref<!tpu.dma_semaphore, #tpu.memory_space<semaphore_mem>>) src(%130 : memref<1x16xf32, #tpu.memory_space<any>>) dst(%131 : memref<1x16xf32, #tpu.memory_space<vmem>>)
      %c4_i32_94 = arith.constant 4 : i32
      %c0_i32_95 = arith.constant 0 : i32
      %c0_i32_96 = arith.constant 0 : i32
      %134 = tpu.memref_slice %arg3[%c0_i32_95, %c0_i32_96] : memref<32x16xf32, #tpu.memory_space<any>> -> memref<1x16xf32, #tpu.memory_space<any>>
      %c4_i32_97 = arith.constant 4 : i32
      %c0_i32_98 = arith.constant 0 : i32
      %135 = tpu.memref_slice %arg6[%c4_i32_97, %c0_i32_98] : memref<8x16xf32, #tpu.memory_space<vmem>> -> memref<1x16xf32, #tpu.memory_space<vmem>>
      %136 = tpu.memref_slice %arg9[%c4_i32_94] : memref<8x!tpu.dma_semaphore, #tpu.memory_space<semaphore_mem>> -> memref<1x!tpu.dma_semaphore, #tpu.memory_space<semaphore_mem>>
      %137 = tpu.memref_squeeze %136 : memref<1x!tpu.dma_semaphore, #tpu.memory_space<semaphore_mem>> -> memref<!tpu.dma_semaphore, #tpu.memory_space<semaphore_mem>>
      tpu.wait_dma2 semaphore(%137 : memref<!tpu.dma_semaphore, #tpu.memory_space<semaphore_mem>>) src(%134 : memref<1x16xf32, #tpu.memory_space<any>>) dst(%135 : memref<1x16xf32, #tpu.memory_space<vmem>>)
      %c5_i32_99 = arith.constant 5 : i32
      %c0_i32_100 = arith.constant 0 : i32
      %c0_i32_101 = arith.constant 0 : i32
      %138 = tpu.memref_slice %arg3[%c0_i32_100, %c0_i32_101] : memref<32x16xf32, #tpu.memory_space<any>> -> memref<1x16xf32, #tpu.memory_space<any>>
      %c5_i32_102 = arith.constant 5 : i32
      %c0_i32_103 = arith.constant 0 : i32
      %139 = tpu.memref_slice %arg6[%c5_i32_102, %c0_i32_103] : memref<8x16xf32, #tpu.memory_space<vmem>> -> memref<1x16xf32, #tpu.memory_space<vmem>>
      %140 = tpu.memref_slice %arg9[%c5_i32_99] : memref<8x!tpu.dma_semaphore, #tpu.memory_space<semaphore_mem>> -> memref<1x!tpu.dma_semaphore, #tpu.memory_space<semaphore_mem>>
      %141 = tpu.memref_squeeze %140 : memref<1x!tpu.dma_semaphore, #tpu.memory_space<semaphore_mem>> -> memref<!tpu.dma_semaphore, #tpu.memory_space<semaphore_mem>>
      tpu.wait_dma2 semaphore(%141 : memref<!tpu.dma_semaphore, #tpu.memory_space<semaphore_mem>>) src(%138 : memref<1x16xf32, #tpu.memory_space<any>>) dst(%139 : memref<1x16xf32, #tpu.memory_space<vmem>>)
      %c6_i32_104 = arith.constant 6 : i32
      %c0_i32_105 = arith.constant 0 : i32
      %c0_i32_106 = arith.constant 0 : i32
      %142 = tpu.memref_slice %arg3[%c0_i32_105, %c0_i32_106] : memref<32x16xf32, #tpu.memory_space<any>> -> memref<1x16xf32, #tpu.memory_space<any>>
      %c6_i32_107 = arith.constant 6 : i32
      %c0_i32_108 = arith.constant 0 : i32
      %143 = tpu.memref_slice %arg6[%c6_i32_107, %c0_i32_108] : memref<8x16xf32, #tpu.memory_space<vmem>> -> memref<1x16xf32, #tpu.memory_space<vmem>>
      %144 = tpu.memref_slice %arg9[%c6_i32_104] : memref<8x!tpu.dma_semaphore, #tpu.memory_space<semaphore_mem>> -> memref<1x!tpu.dma_semaphore, #tpu.memory_space<semaphore_mem>>
      %145 = tpu.memref_squeeze %144 : memref<1x!tpu.dma_semaphore, #tpu.memory_space<semaphore_mem>> -> memref<!tpu.dma_semaphore, #tpu.memory_space<semaphore_mem>>
      tpu.wait_dma2 semaphore(%145 : memref<!tpu.dma_semaphore, #tpu.memory_space<semaphore_mem>>) src(%142 : memref<1x16xf32, #tpu.memory_space<any>>) dst(%143 : memref<1x16xf32, #tpu.memory_space<vmem>>)
      %c7_i32_109 = arith.constant 7 : i32
      %c0_i32_110 = arith.constant 0 : i32
      %c0_i32_111 = arith.constant 0 : i32
      %146 = tpu.memref_slice %arg3[%c0_i32_110, %c0_i32_111] : memref<32x16xf32, #tpu.memory_space<any>> -> memref<1x16xf32, #tpu.memory_space<any>>
      %c7_i32_112 = arith.constant 7 : i32
      %c0_i32_113 = arith.constant 0 : i32
      %147 = tpu.memref_slice %arg6[%c7_i32_112, %c0_i32_113] : memref<8x16xf32, #tpu.memory_space<vmem>> -> memref<1x16xf32, #tpu.memory_space<vmem>>
      %148 = tpu.memref_slice %arg9[%c7_i32_109] : memref<8x!tpu.dma_semaphore, #tpu.memory_space<semaphore_mem>> -> memref<1x!tpu.dma_semaphore, #tpu.memory_space<semaphore_mem>>
      %149 = tpu.memref_squeeze %148 : memref<1x!tpu.dma_semaphore, #tpu.memory_space<semaphore_mem>> -> memref<!tpu.dma_semaphore, #tpu.memory_space<semaphore_mem>>
      tpu.wait_dma2 semaphore(%149 : memref<!tpu.dma_semaphore, #tpu.memory_space<semaphore_mem>>) src(%146 : memref<1x16xf32, #tpu.memory_space<any>>) dst(%147 : memref<1x16xf32, #tpu.memory_space<vmem>>)
      %cst_114 = arith.constant 0xFF800000 : f32
      %150 = vector.broadcast %cst_114 : f32 to vector<8x1xf32>
      %c0_115 = arith.constant 0 : index
      %c0_116 = arith.constant 0 : index
      %151 = vector.load %arg7[%c0_115, %c0_116] : memref<8x1xf32, #tpu.memory_space<vmem>>, vector<8x1xf32>
      tpu.vector_store %arg7[%c0_115, %c0_116], %150 {strides = array<i32>} : memref<8x1xf32, #tpu.memory_space<vmem>>, vector<8x1xf32>,
      %cst_117 = arith.constant 0.000000e+00 : f32
      %152 = vector.broadcast %cst_117 : f32 to vector<8x1xf32>
      %c0_118 = arith.constant 0 : index
      %c0_119 = arith.constant 0 : index
      %153 = vector.load %arg8[%c0_118, %c0_119] : memref<8x1xf32, #tpu.memory_space<vmem>>, vector<8x1xf32>
      tpu.vector_store %arg8[%c0_118, %c0_119], %152 {strides = array<i32>} : memref<8x1xf32, #tpu.memory_space<vmem>>, vector<8x1xf32>,
    } else {
    }
    %c0 = arith.constant 0 : index
    %c0_1 = arith.constant 0 : index
    %3 = vector.load %arg6[%c0, %c0_1] : memref<8x16xf32, #tpu.memory_space<vmem>>, vector<8x16xf32>
    %4 = arith.truncf %3 : vector<8x16xf32> to vector<8x16xbf16>
    %c0_2 = arith.constant 0 : index
    %c0_3 = arith.constant 0 : index
    %5 = vector.load %arg4[%c0_2, %c0_3] : memref<16x128xbf16, #tpu.memory_space<vmem>>, vector<16x128xbf16>
    %cst = arith.constant dense<0.000000e+00> : vector<8x128xf32>
    %6 = tpu.matmul %4, %5, %cst {dimension_numbers = #tpu.dot_dimension_numbers<[1], [0], [0], [1], [0, 0, 1, 1], [], []>} : vector<8x16xbf16>, vector<16x128xbf16>, vector<8x128xf32> -> vector<8x128xf32>
    %c128_i32 = arith.constant 128 : i32
    %7 = arith.muli %arg1, %c128_i32 : i32
    %8 = tpu.iota {dimensions = array<i32: 1>} : vector<8x128xi32>
    %9 = vector.broadcast %7 : i32 to vector<8x128xi32>
    %10 = arith.addi %9, %8 : vector<8x128xi32>
    %c32_i32 = arith.constant 32 : i32
    %11 = vector.broadcast %c32_i32 : i32 to vector<8x128xi32>
    %12 = arith.cmpi slt, %10, %11 : vector<8x128xi32>
    %cst_4 = arith.constant -1.000000e+30 : f32
    %13 = vector.broadcast %cst_4 : f32 to vector<8x128xf32>
    %14 = arith.select %12, %6, %13 : vector<8x128xi1>, vector<8x128xf32>
    %c0_5 = arith.constant 0 : index
    %c0_6 = arith.constant 0 : index
    %15 = vector.load %arg7[%c0_5, %c0_6] : memref<8x1xf32, #tpu.memory_space<vmem>>, vector<8x1xf32>
    %cst_7 = arith.constant dense<0xFF800000> : vector<8xf32>
    %16 = vector.multi_reduction <maximumf>, %14, %cst_7 [1] : vector<8x128xf32> to vector<8xf32>
    %17 = vector.shape_cast %16 : vector<8xf32> to vector<8x1xf32>
    %18 = arith.maximumf %15, %17 : vector<8x1xf32>
    %c0_8 = arith.constant 0 : index
    %c0_9 = arith.constant 0 : index
    %19 = vector.load %arg8[%c0_8, %c0_9] : memref<8x1xf32, #tpu.memory_space<vmem>>, vector<8x1xf32>
    %20 = arith.subf %15, %18 : vector<8x1xf32>
    %21 = math.exp %20 : vector<8x1xf32>
    %22 = arith.mulf %19, %21 : vector<8x1xf32>
    %23 = vector.broadcast %18 : vector<8x1xf32> to vector<8x128xf32>
    %24 = arith.subf %14, %23 : vector<8x128xf32>
    %25 = math.exp %24 : vector<8x128xf32>
    %cst_10 = arith.constant dense<0.000000e+00> : vector<8xf32>
    %26 = vector.multi_reduction <add>, %25, %cst_10 [1] : vector<8x128xf32> to vector<8xf32>
    %27 = vector.shape_cast %26 : vector<8xf32> to vector<8x1xf32>
    %28 = arith.addf %22, %27 : vector<8x1xf32>
    %c0_11 = arith.constant 0 : index
    %c0_12 = arith.constant 0 : index
    %29 = vector.load %arg8[%c0_11, %c0_12] : memref<8x1xf32, #tpu.memory_space<vmem>>, vector<8x1xf32>
    tpu.vector_store %arg8[%c0_11, %c0_12], %28 {strides = array<i32>} : memref<8x1xf32, #tpu.memory_space<vmem>>, vector<8x1xf32>,
    %c0_13 = arith.constant 0 : index
    %c0_14 = arith.constant 0 : index
    %30 = vector.load %arg7[%c0_13, %c0_14] : memref<8x1xf32, #tpu.memory_space<vmem>>, vector<8x1xf32>
    tpu.vector_store %arg7[%c0_13, %c0_14], %18 {strides = array<i32>} : memref<8x1xf32, #tpu.memory_space<vmem>>, vector<8x1xf32>,
    %c128_i32_15 = arith.constant 128 : i32
    %31 = arith.muli %arg1, %c128_i32_15 : i32
    %32 = tpu.assume_multiple %31, 128 : i32
    %c0_16 = arith.constant 0 : index
    %33 = arith.index_cast %32 : i32 to index
    %34 = vector.load %arg5[%c0_16, %33] : memref<8x128xf32, #tpu.memory_space<vmem>>, vector<8x128xf32>
    tpu.vector_store %arg5[%c0_16, %33], %14 {strides = array<i32>} : memref<8x128xf32, #tpu.memory_space<vmem>>, vector<8x128xf32>,
    %c0_i32_17 = arith.constant 0 : i32
    %35 = arith.cmpi eq, %arg1, %c0_i32_17 : i32
    %36 = arith.extui %35 : i1 to i32
    %c0_i32_18 = arith.constant 0 : i32
    %37 = arith.cmpi ne, %36, %c0_i32_18 : i32
    scf.if %37 {
      %c0_19 = arith.constant 0 : index
      %c0_20 = arith.constant 0 : index
      %38 = vector.load %arg5[%c0_19, %c0_20] : memref<8x128xf32, #tpu.memory_space<vmem>>, vector<8x128xf32>
      %c0_21 = arith.constant 0 : index
      %c0_22 = arith.constant 0 : index
      %39 = vector.load %arg7[%c0_21, %c0_22] : memref<8x1xf32, #tpu.memory_space<vmem>>, vector<8x1xf32>
      %40 = vector.broadcast %39 : vector<8x1xf32> to vector<8x128xf32>
      %41 = arith.subf %38, %40 : vector<8x128xf32>
      %42 = math.exp %41 : vector<8x128xf32>
      %c0_23 = arith.constant 0 : index
      %c0_24 = arith.constant 0 : index
      %43 = vector.load %arg8[%c0_23, %c0_24] : memref<8x1xf32, #tpu.memory_space<vmem>>, vector<8x1xf32>
      %44 = tpu.reciprocal %43 {approx = true} : vector<8x1xf32> -> vector<8x1xf32>
      %45 = vector.broadcast %44 : vector<8x1xf32> to vector<8x128xf32>
      %46 = arith.mulf %42, %45 : vector<8x128xf32>
      %c0_25 = arith.constant 0 : index
      %c0_26 = arith.constant 0 : index
      %47 = vector.load %arg5[%c0_25, %c0_26] : memref<8x128xf32, #tpu.memory_space<vmem>>, vector<8x128xf32>
      tpu.vector_store %arg5[%c0_25, %c0_26], %46 {strides = array<i32>} : memref<8x128xf32, #tpu.memory_space<vmem>>, vector<8x128xf32>,
    } else {
    }
    return
  }
  func.func @transform_1(%arg0: i32, %arg1: i32, %arg2: memref<8xi32, #tpu.memory_space<smem>>) -> (i32, i32) {
    %c0_i32 = arith.constant 0 : i32
    %c0_i32_0 = arith.constant 0 : i32
    return %c0_i32, %arg1 : i32, i32
  }
  func.func @transform_2(%arg0: i32, %arg1: i32, %arg2: memref<8xi32, #tpu.memory_space<smem>>) -> (i32, i32) {
    %c0_i32 = arith.constant 0 : i32
    %c0_i32_0 = arith.constant 0 : i32
    return %arg0, %c0_i32 : i32, i32
  }
}

</mosaic_0001>

<bundles_post_ra>
// kernel: tpu_custom_call.1
= control target key start
LH: loop header
LB: loop body
LE: loop exit
PB: predicated region body
PF: predicated region fallthrough
CT: control target
= control target key end

     0   :  { %s963_s0 = inlined_call_operand.vmem [shape: s32[8], index: 0, kind: input, shape index: {}]   ;;  %s964_s1 = inlined_call_operand.vmem [shape: f32[32,16], index: 1, kind: input, shape index: {}]   ;;  %s965_s2 = inlined_call_operand.vmem [shape: bf16[16,128], index: 2, kind: input, shape index: {}]   ;;  %s966_s3 = inlined_call_operand.hbm [shape: f32[8,128], index: 3, kind: output, shape index: {}]  }
   0x1   :  { %s8_s14 = sshll.u32 %s963_s0, 4  ;;  %s9_s14 = int_to_ptr.vmem [resolvable:$true] %s8_s14 }
   0x2   :  { %s837_s15 = scalar_lea.vmem %s9_s14, 16  ;;  %p842_p1 = scmp.lt.s32.totalorder %s9_s14, %s9_s14 }
   0x3   :  { %p838_p0 = scmp.ne.s32.totalorder %s9_s14, %s837_s15  ;;  %p843_p2 = scmp.lt.s32.totalorder %s837_s15, %s837_s15 }
   0x5   :  { %p844_p3 = por %p843_p2, %p842_p1 }
   0x7   :  { %p845_p4 = pnand %p844_p3, %p838_p0 }
   0x9   :  { %848 = shalt.err (!%p845_p4)  }
   0xa   :  { %s891_s16 = smov [#allocation7]  }
   0xb   :  { %11 = dma.vmem_to_smem %s9_s14, 16, %s891_s16, [#allocation6] }
   0xc   :  { %871 = dma.done.wait [#allocation6], 16 }
   0xd   :  { %872 = vsyncadd [#allocation6], 4294967280 }
   0xe   :  { %13 = sfence }
   0xf   :  { %14 = vsyncpa [#allocation9], 0  ;;  %s23_s17 = sld [smem:[#allocation7]] }
  0x15   :  { %p24_p5 = scmp.gt.s32.totalorder %s23_s17, 0  ;;  %p739_p6 = scmp.lt.s32.totalorder %s23_s17, 31 }
  0x17   :  { %s968_s17 = smov (!%p24_p5, %s23_s17), 0 }
  0x18   :  { %s970_s17 = smov (!%p739_p6, %s968_s17), 31 }
  0x19   :  { %s28_s19 = scalar_lea.vmem %s964_s1, %s970_s17 }
  0x1a   :  { %v46_v0 = vld [vmem:[%s28_s19] sm:$0x1] }
  0x1b   :  { %47 = vst [vmem:[#allocation2] sm:$0x1] %v46_v0 }
  0x1c   :  { %72 = vsyncadd [#allocation5], 16  ;;  %s744_s20 = sld [smem:[#allocation7 + $0x1]] }
  0x22   :  { %p75_p7 = scmp.gt.s32.totalorder %s744_s20, 0  ;;  %p745_p8 = scmp.lt.s32.totalorder %s744_s20, 31 }
  0x24   :  { %s972_s20 = smov (!%p75_p7, %s744_s20), 0 }
  0x25   :  { %s974_s20 = smov (!%p745_p8, %s972_s20), 31 }
  0x26   :  { %s79_s23 = scalar_lea.vmem %s964_s1, %s974_s20 }
  0x27   :  { %v99_v1 = vld [vmem:[%s79_s23] sm:$0x1] }
  0x28   :  { %100 = vst [vmem:[#allocation2 + $0x1] sm:$0x1] %v99_v1 }
  0x29   :  { %125 = vsyncadd [#allocation5 + $0x1], 16  ;;  %s750_s24 = sld [smem:[#allocation7 + $0x2]] }
  0x2f   :  { %p128_p9 = scmp.gt.s32.totalorder %s750_s24, 0  ;;  %p751_p10 = scmp.lt.s32.totalorder %s750_s24, 31 }
  0x31   :  { %s976_s24 = smov (!%p128_p9, %s750_s24), 0 }
  0x32   :  { %s978_s24 = smov (!%p751_p10, %s976_s24), 31 }
  0x33   :  { %s132_s27 = scalar_lea.vmem %s964_s1, %s978_s24 }
  0x34   :  { %v152_v2 = vld [vmem:[%s132_s27] sm:$0x1] }
  0x35   :  { %153 = vst [vmem:[#allocation2 + $0x2] sm:$0x1] %v152_v2 }
  0x36   :  { %178 = vsyncadd [#allocation5 + $0x2], 16  ;;  %s756_s28 = sld [smem:[#allocation7 + $0x3]] }
  0x3c   :  { %p181_p11 = scmp.gt.s32.totalorder %s756_s28, 0  ;;  %p757_p12 = scmp.lt.s32.totalorder %s756_s28, 31 }
  0x3e   :  { %s980_s28 = smov (!%p181_p11, %s756_s28), 0 }
  0x3f   :  { %s982_s28 = smov (!%p757_p12, %s980_s28), 31 }
  0x40   :  { %s185_s4 = scalar_lea.vmem %s964_s1, %s982_s28 }
  0x41   :  { %v205_v3 = vld [vmem:[%s185_s4] sm:$0x1] }
  0x42   :  { %206 = vst [vmem:[#allocation2 + $0x3] sm:$0x1] %v205_v3 }
  0x43   :  { %231 = vsyncadd [#allocation5 + $0x3], 16  ;;  %s762_s5 = sld [smem:[#allocation7 + $0x4]] }
  0x49   :  { %p234_p13 = scmp.gt.s32.totalorder %s762_s5, 0  ;;  %p763_p0 = scmp.lt.s32.totalorder %s762_s5, 31 }
  0x4b   :  { %s984_s5 = smov (!%p234_p13, %s762_s5), 0 }
  0x4c   :  { %s986_s5 = smov (!%p763_p0, %s984_s5), 31 }
  0x4d   :  { %s238_s8 = scalar_lea.vmem %s964_s1, %s986_s5 }
  0x4e   :  { %v258_v4 = vld [vmem:[%s238_s8] sm:$0x1] }
  0x4f   :  { %259 = vst [vmem:[#allocation2 + $0x4] sm:$0x1] %v258_v4 }
  0x50   :  { %284 = vsyncadd [#allocation5 + $0x4], 16  ;;  %s768_s9 = sld [smem:[#allocation7 + $0x5]] }
  0x56   :  { %p287_p1 = scmp.gt.s32.totalorder %s768_s9, 0  ;;  %p769_p2 = scmp.lt.s32.totalorder %s768_s9, 31 }
  0x58   :  { %s988_s9 = smov (!%p287_p1, %s768_s9), 0 }
  0x59   :  { %s990_s9 = smov (!%p769_p2, %s988_s9), 31 }
  0x5a   :  { %s291_s12 = scalar_lea.vmem %s964_s1, %s990_s9 }
  0x5b   :  { %v311_v5 = vld [vmem:[%s291_s12] sm:$0x1] }
  0x5c   :  { %312 = vst [vmem:[#allocation2 + $0x5] sm:$0x1] %v311_v5 }
  0x5d   :  { %337 = vsyncadd [#allocation5 + $0x5], 16  ;;  %s774_s13 = sld [smem:[#allocation7 + $0x6]] }
  0x63   :  { %p340_p3 = scmp.gt.s32.totalorder %s774_s13, 0  ;;  %p775_p4 = scmp.lt.s32.totalorder %s774_s13, 31 }
  0x65   :  { %s992_s13 = smov (!%p340_p3, %s774_s13), 0 }
  0x66   :  { %s994_s13 = smov (!%p775_p4, %s992_s13), 31 }
  0x67   :  { %s344_s16 = scalar_lea.vmem %s964_s1, %s994_s13 }
  0x68   :  { %v364_v6 = vld [vmem:[%s344_s16] sm:$0x1] }
  0x69   :  { %365 = vst [vmem:[#allocation2 + $0x6] sm:$0x1] %v364_v6 }
  0x6a   :  { %390 = vsyncadd [#allocation5 + $0x6], 16  ;;  %s780_s17 = sld [smem:[#allocation7 + $0x7]] }
  0x70   :  { %p393_p5 = scmp.gt.s32.totalorder %s780_s17, 0  ;;  %p781_p6 = scmp.lt.s32.totalorder %s780_s17, 31 }
  0x72   :  { %s996_s17 = smov (!%p393_p5, %s780_s17), 0 }
  0x73   :  { %s998_s17 = smov (!%p781_p6, %s996_s17), 31 }
  0x74   :  { %s397_s19 = scalar_lea.vmem %s964_s1, %s998_s17 }
  0x75   :  { %v417_v7 = vld [vmem:[%s397_s19] sm:$0x1] }
  0x76   :  { %418 = vst [vmem:[#allocation2 + $0x7] sm:$0x1] %v417_v7 }
  0x77   :  { %443 = vsyncadd [#allocation5 + $0x7], 16 }
  0x78   :  { %873 = dma.done.wait [#allocation5], 16 }
  0x79   :  { %874 = vsyncadd [#allocation5], 4294967280 }
  0x7a   :  { %875 = dma.done.wait [#allocation5 + $0x1], 16 }
  0x7b   :  { %876 = vsyncadd [#allocation5 + $0x1], 4294967280 }
  0x7c   :  { %877 = dma.done.wait [#allocation5 + $0x2], 16 }
  0x7d   :  { %878 = vsyncadd [#allocation5 + $0x2], 4294967280 }
  0x7e   :  { %879 = dma.done.wait [#allocation5 + $0x3], 16 }
  0x7f   :  { %880 = vsyncadd [#allocation5 + $0x3], 4294967280 }
  0x80   :  { %881 = dma.done.wait [#allocation5 + $0x4], 16 }
  0x81   :  { %882 = vsyncadd [#allocation5 + $0x4], 4294967280 }
  0x82   :  { %883 = dma.done.wait [#allocation5 + $0x5], 16 }
  0x83   :  { %884 = vsyncadd [#allocation5 + $0x5], 4294967280 }
  0x84   :  { %885 = dma.done.wait [#allocation5 + $0x6], 16 }
  0x85   :  { %886 = vsyncadd [#allocation5 + $0x6], 4294967280 }
  0x86   :  { %887 = dma.done.wait [#allocation5 + $0x7], 16 }
  0x87   :  { %888 = vsyncadd [#allocation5 + $0x7], 4294967280  ;;  %vm461_vm0 = vcmask 7168   ;;  %v892_v8 = vmov -inf   ;;  %v893_v9 = vmov 0.0   ;;  %vm894_vm1 = vmmov 0  }
  0x88   :  { %462 = vst.msk [vmem:[#allocation3] sm:$0xff] %vm461_vm0, %v892_v8  ;;  %463 = vst.msk [vmem:[#allocation4] sm:$0xff] %vm461_vm0, %v893_v9  ;;  %814 = vmatprep.subr.bf16.mxu0 %v893_v9  ;;  %816 = vmatprep.mubr.msk.bf16.mxu0 %vm894_vm1, %v893_v9  ;;  %v828_v10 = vld [vmem:[%s965_s2] sm:$0xff]   ;;  %vm474_vm2 = vcmask 130048   ;;  %v519_v13 = vlaneseq  ;;  %v895_v20 = vmov 0   ;;  %s896_s2 = smov [#allocation8]  }
  0x89   :  { %v464_v11 = vld [vmem:[#allocation2] sm:$0xff]  ;;  %815 = vmatpush3.bf16.msra.mxu0 %v828_v10  ;;  %826 = vset.pattern.permute.xlu0 %v895_v20  ;;  %s580_s21 = sshll.u32 %s896_s2, 4  ;;  %s581_s21 = int_to_ptr.vmem [resolvable:$true] %s580_s21 }
  0x8a   :  { %v465_v12 = vpack.c.bf16 %v464_v11, %v464_v11  ;;  %v520_v14 = vand.u32 127, %v519_v13  ;;  %827 = vset.pattern.permute.xlu1 %v895_v20  ;;  %s849_s22 = scalar_lea.vmem %s581_s21, 128  ;;  %p854_p8 = scmp.lt.s32.totalorder %s581_s21, %s581_s21 }
  0x8b   :  { %p850_p7 = scmp.ne.s32.totalorder %s581_s21, %s849_s22  ;;  %p855_p9 = scmp.lt.s32.totalorder %s849_s22, %s849_s22 }
  0x8c   :  { %817 = vmatmul.mubr.msk.bf16.vlgmr.msra.gmra.mrb[0].mxu0 %vm474_vm2, %v465_v12  ;;  %vm523_vm3 = vcmp.lt.s32.totalorder %v520_v14, 32 }
  0x8d   :  { %p856_p10 = por %p855_p9, %p854_p8 }
  0x8f   :  { %v525_v21 = vld [vmem:[#allocation3] sm:$0xff]  ;;  %v529_v32 = vld [vmem:[#allocation4] sm:$0xff]  ;;  %p857_p11 = pnand %p856_p10, %p850_p7 }
 0x15f   :  { %v512_v15 = vpop.f32.mrb[0].mxu0 }
 0x160   :  { %v524_v16 = vsel %vm523_vm3, %v512_v15, -1e+30  ;;  %v818_v17 = vpop.f32.mrb[1].mxu0 }
 0x161   :  { %526 = vmax.xlane.f32.xlu0 %v524_v16  ;;  %v515_v18 = vpop.f32.mrb[2].mxu0 }
 0x162   :  { %v819_v19 = vpop.f32.mrb[3].mxu0 }
 0x1ee   :  { %v527_v22 = vpop.xlane.xlu0 %526 }
 0x1ef   :  { %v528_v23 = vmax.f32 %v525_v21, %v527_v22 }
 0x1f1   :  { %v530_v24 = vsub.f32 %v525_v21, %v528_v23  ;;  %547 = vst.msk [vmem:[#allocation3] sm:$0xff] %vm461_vm0, %v528_v23  ;;  %536 = vperm.xlu0 %826, %v528_v23  }
 0x1f3   :  { %v531_v30 = vmul.f32 1.442695, %v530_v24 }
 0x1f8   :  { %v556_v29 = vld [vmem:[#allocation3] sm:$0xff] }
 0x270   :  { %v537_v25 = vpop.permute.xlu0 %536 }
 0x271   :  { %v539_v26 = vsub.f32 %v524_v16, %v537_v25 }
 0x273   :  { %v540_v27 = vmul.f32 1.442695, %v539_v26 }
 0x275   :  { %829 = vpow2.f32 %v540_v27 }
 0x276   :  { %831 = vpow2.f32 %v531_v30 }
 0x27f   :  { %v830_v28 = vpop.eup %829 }
 0x280   :  { %542 = vadd.xlane.f32.xlu1 %v830_v28  ;;  %v832_v31 = vpop.eup %831 }
 0x281   :  { %v533_v33 = vmul.f32 %v832_v31, %v529_v32 }
 0x291   :  { %559 = vperm.xlu1 %827, %v556_v29  }
 0x30d   :  { %v543_v34 = vpop.xlane.xlu1 %542 }
 0x30e   :  { %v544_v35 = vadd.f32 %v543_v34, %v533_v33 }
 0x310   :  { %546 = vst.msk [vmem:[#allocation4] sm:$0xff] %vm461_vm0, %v544_v35 }
 0x311   :  { %v560_v38 = vpop.permute.xlu1 %559 }
 0x312   :  { %v562_v39 = vsub.f32 %v524_v16, %v560_v38 }
 0x314   :  { %v563_v40 = vmul.f32 1.442695, %v562_v39 }
 0x317   :  { %v565_v36 = vld [vmem:[#allocation4] sm:$0xff] }
 0x318   :  { %833 = vrcp.f32 %v565_v36 }
 0x319   :  { %835 = vpow2.f32 %v563_v40 }
 0x322   :  { %v834_v37 = vpop.eup %833 }
 0x323   :  { %569 = vperm.xlu1 %827, %v834_v37   ;;  %v836_v41 = vpop.eup %835 }
 0x3a2   :  { %v570_v42 = vpop.permute.xlu1 %569 }
 0x3a3   :  { %v572_v43 = vmul.f32 %v836_v41, %v570_v42 }
 0x3a5   :  { %573 = vst [vmem:[#allocation8] sm:$0xff] %v572_v43 }
 0x3a6   :  { %860 = shalt.err (!%p857_p11)
}
 0x3a7   :  { %s861_s25 = scalar_lea.hbm %s966_s3, 128 }
 0x3a8   :  { %p862_p12 = scmp.ne.s32.totalorder %s966_s3, %s861_s25  ;;  %p865_p13 = scmp.lt.u32.totalorder %s861_s25, %s966_s3 }
 0x3aa   :  { %p867_p0 = pnand %p865_p13, %p862_p12 }
 0x3ac   :  { %870 = shalt.err (!%p867_p0)
}
 0x3ad   :  { %583 = dma.vmem_to_hbm [thread:$0]  %s581_s21, 128, %s966_s3, [#allocation9]  }
 0x3ae   :  { %889 = dma.done.wait [#allocation9], 128  }
 0x3af   :  { %890 = vsyncadd [#allocation9], 4294967168 }
 0x3b0   :  { %587 = vsyncpa [#allocation9], 1 }
 0x3b1   :  { %588 = vsyncmov [#allocation5] }
 0x3b4   :  { %s589_s5 = vpop.sfrf %588 }
 0x3b5   :  { %p788_p1 = scmp.ne.s32.totalorder %s589_s5, 0 }
 0x3b7   :  { %593 = shalt.err (%p788_p1)  }
 0x3b8   :  { %595 = vsyncmov [#allocation5 + $0x1] }
 0x3bb   :  { %s596_s6 = vpop.sfrf %595 }
 0x3bc   :  { %p789_p2 = scmp.ne.s32.totalorder %s596_s6, 0 }
 0x3be   :  { %600 = shalt.err (%p789_p2)  }
 0x3bf   :  { %602 = vsyncmov [#allocation5 + $0x2] }
 0x3c2   :  { %s603_s7 = vpop.sfrf %602 }
 0x3c3   :  { %p790_p3 = scmp.ne.s32.totalorder %s603_s7, 0 }
 0x3c5   :  { %607 = shalt.err (%p790_p3)  }
 0x3c6   :  { %609 = vsyncmov [#allocation5 + $0x3] }
 0x3c9   :  { %s610_s8 = vpop.sfrf %609 }
 0x3ca   :  { %p791_p4 = scmp.ne.s32.totalorder %s610_s8, 0 }
 0x3cc   :  { %614 = shalt.err (%p791_p4)  }
 0x3cd   :  { %616 = vsyncmov [#allocation5 + $0x4] }
 0x3d0   :  { %s617_s3 = vpop.sfrf %616 }
 0x3d1   :  { %p792_p5 = scmp.ne.s32.totalorder %s617_s3, 0 }
 0x3d3   :  { %621 = shalt.err (%p792_p5)  }
 0x3d4   :  { %623 = vsyncmov [#allocation5 + $0x5] }
 0x3d7   :  { %s624_s9 = vpop.sfrf %623 }
 0x3d8   :  { %p793_p6 = scmp.ne.s32.totalorder %s624_s9, 0 }
 0x3da   :  { %628 = shalt.err (%p793_p6)  }
 0x3db   :  { %630 = vsyncmov [#allocation5 + $0x6] }
 0x3de   :  { %s631_s10 = vpop.sfrf %630 }
 0x3df   :  { %p794_p7 = scmp.ne.s32.totalorder %s631_s10, 0 }
 0x3e1   :  { %635 = shalt.err (%p794_p7)  }
 0x3e2   :  { %637 = vsyncmov [#allocation5 + $0x7] }
 0x3e5   :  { %s638_s11 = vpop.sfrf %637 }
 0x3e6   :  { %p795_p8 = scmp.ne.s32.totalorder %s638_s11, 0 }
 0x3e8   :  { %642 = shalt.err (%p795_p8)  }

</bundles_post_ra>
